<compile_context>
chip_gen: v7x
topology: tpu7x:2x2x1
jax: 0.10.0
libtpu: 0.0.40
codegen_flags: <defaults>
</compile_context>

<pallas_src>
import functools

import jax
import jax.numpy as jnp
from jax.experimental import pallas as pl
from jax.experimental.pallas import tpu as pltpu


# ----------------------------------------------------------------------------- kernel
def _maxout_kernel(x_ref, w_ref, b_ref, o_ref, acc_ref, *, pieces, tn):
    """Grid = (i over batch tiles, j over out tiles, k over in_f tiles).

    x_ref  : (tm, tk)              compute dtype (bf16 or f32)
    w_ref  : (tk, pieces*tn)       compute dtype, piece-major packed
    b_ref  : (1,  pieces*tn)       f32, piece-major packed
    o_ref  : (tm, tn)              f32
    acc_ref: (tm, pieces*tn)       f32 scratch, persists across k
    """
    k = pl.program_id(2)

    @pl.when(k == 0)
    def _():
        # Bias folded into the accumulator init (this write happened anyway).
        acc_ref[...] = jnp.broadcast_to(b_ref[...], acc_ref.shape)

    # One lane-dense MXU matmul per grid step, f32 accumulation.
    acc_ref[...] += jnp.dot(
        x_ref[...], w_ref[...], preferred_element_type=jnp.float32
    )

    @pl.when(k == pl.num_programs(2) - 1)
    def _():
        y = acc_ref[...]                         # (tm, pieces*tn) f32
        m = y[:, 0:tn]
        for p in range(1, pieces):               # static unroll, lane-aligned slices
            m = jnp.maximum(m, y[:, p * tn:(p + 1) * tn])
        o_ref[...] = m.astype(o_ref.dtype)       # single lane-dense (tm, tn) store


# ----------------------------------------------------------------------------- helpers
def _round_up(x, m):
    return (x + m - 1) // m * m


def _choose_tile(dim, candidates):
    for c in candidates:
        if dim >= c and dim % c == 0:
            return c
    return dim


def _vmem_bytes(tm, tk, tn, pieces, elem, w_bufs):
    """Estimated VMEM footprint of the pipeline buffers + scratch."""
    ptn = pieces * tn
    return (2 * tm * tk * elem          # x double-buffer
            + w_bufs * tk * ptn * elem  # weight buffers (2 or 3)
            + 2 * ptn * 4               # bias double-buffer (f32)
            + 2 * tm * tn * 4           # output double-buffer (f32)
            + tm * ptn * 4)             # f32 accumulator scratch


def _select_tiles(B, in_f, out_pad, pieces, elem, budget=40 << 20):
    tn = 256 if out_pad % 256 == 0 else 128
    tm = _choose_tile(B, (1024, 512, 256, 128, 64, 32, 16, 8))
    tk = _choose_tile(in_f, (1024, 512, 256, 128))

    def fits(tm_, tk_, tn_):
        return _vmem_bytes(tm_, tk_, tn_, pieces, elem, 2) <= budget

    while not fits(tm, tk, tn) and tn > 128 and out_pad % (tn // 2) == 0:
        tn //= 2
    while not fits(tm, tk, tn) and tk > 128 and in_f % (tk // 2) == 0:
        tk //= 2
    while (not fits(tm, tk, tn) and tm > 8 and B % (tm // 2) == 0
           and (tm // 2) % 8 == 0):
        tm //= 2
    return tm, tn, tk


def pack_maxout_params(w, b, *, out_features, out_pad, pieces, tn, dtype):
    """Rearrange torch-style Linear params for the kernel.

    w: (pieces*out_features, in_features), row index = p*out_features + o
       (matches torch's .view(-1, pieces, out_features) grouping).
    b: (pieces*out_features,)

    Returns
      w_tiled: (num_n, in_f, pieces*tn); within out-tile j, packed column
               p*tn + t is piece p, out column j*tn + t (zero-padded cols).
      b_tiled: (num_n, 1, pieces*tn), f32, packed the same way.
    """
    in_f = w.shape[1]
    num_n = out_pad // tn

    w3 = w.reshape(pieces, out_features, in_f)
    b2 = b.reshape(pieces, out_features)
    if out_pad != out_features:
        pad = out_pad - out_features
        w3 = jnp.pad(w3, ((0, 0), (0, pad), (0, 0)))
        b2 = jnp.pad(b2, ((0, 0), (0, pad)))

    w4 = w3.reshape(pieces, num_n, tn, in_f)                       # [p, j, t, in]
    w_tiled = jnp.transpose(w4, (1, 3, 0, 2)).reshape(num_n, in_f, pieces * tn)
    b3 = b2.reshape(pieces, num_n, tn)                             # [p, j, t]
    b_tiled = jnp.transpose(b3, (1, 0, 2)).reshape(num_n, 1, pieces * tn)
    return w_tiled.astype(dtype), b_tiled.astype(jnp.float32)


# ----------------------------------------------------------------------------- pallas_call wrapper
def maxout(x, w_tiled, b_tiled, *, out_pad, pieces, tm, tn, tk):
    B, in_f = x.shape
    num_m, num_n, num_k = B // tm, out_pad // tn, in_f // tk
    elem = jnp.dtype(x.dtype).itemsize
    ptn = pieces * tn

    # Optional deeper weight pipelining for small-tm, deep-K (weight-DMA-bound).
    use_buffered_w = (tm <= 256) and (num_k >= 2)
    w_bufs = 3 if use_buffered_w else 2
    est = _vmem_bytes(tm, tk, tn, pieces, elem, w_bufs)
    if use_buffered_w and est > (40 << 20):
        use_buffered_w, w_bufs = False, 2
        est = _vmem_bytes(tm, tk, tn, pieces, elem, w_bufs)
    vmem_limit = min(64 << 20, max(est + (8 << 20), 32 << 20))  # v7x-safe cap

    w_idx = lambda i, j, k: (j, k, 0)
    w_spec = pl.BlockSpec((pl.Squeezed(), tk, ptn), w_idx)
    if use_buffered_w:
        try:
            w_spec = pl.BlockSpec((pl.Squeezed(), tk, ptn), w_idx,
                                  pipeline_mode=pl.Buffered(3))
        except TypeError:  # older BlockSpec without pipeline_mode
            pass

    kernel = functools.partial(_maxout_kernel, pieces=pieces, tn=tn)

    return pl.pallas_call(
        kernel,
        out_shape=jax.ShapeDtypeStruct((B, out_pad), jnp.float32),
        grid_spec=pltpu.PrefetchScalarGridSpec(
            num_scalar_prefetch=0,
            grid=(num_m, num_n, num_k),
            in_specs=[
                pl.BlockSpec((tm, tk), lambda i, j, k: (i, k)),
                w_spec,
                pl.BlockSpec((pl.Squeezed(), 1, ptn), lambda i, j, k: (j, 0, 0)),
            ],
            out_specs=pl.BlockSpec((tm, tn), lambda i, j, k: (i, j)),
            scratch_shapes=[pltpu.VMEM((tm, ptn), jnp.float32)],
        ),
        compiler_params=pltpu.CompilerParams(
            dimension_semantics=("parallel", "parallel", "arbitrary"),
            vmem_limit_bytes=int(vmem_limit),
        ),
        cost_estimate=pl.CostEstimate(
            flops=2 * B * in_f * out_pad * pieces,
            transcendentals=0,
            bytes_accessed=(num_n * B * in_f * elem          # x re-fetched per out tile
                            + num_m * w_tiled.size * elem    # W re-fetched per batch tile
                            + num_m * b_tiled.size * 4
                            + B * out_pad * 4),
        ),
    )(x, w_tiled, b_tiled)


def maxout_forward(x, w_torch_like, b_torch_like, *, out_features, pieces,
                   compute_dtype=jnp.bfloat16):
    """End-to-end Maxout forward: pad/pack params, pick tiles, run the kernel."""
    x2 = x.reshape(-1, x.shape[-1])
    B, in_f = x2.shape
    out_pad = _round_up(out_features, 128)          # lane-dense tn & piece slices
    elem = jnp.dtype(compute_dtype).itemsize

    tm, tn, tk = _select_tiles(B, in_f, out_pad, pieces, elem)
    # v7x has 2 TensorCores: make sure there are >=2 parallel tiles when B allows.
    if ((B // tm) * (out_pad // tn) < 2 and tm >= 16
            and B % (tm // 2) == 0 and (tm // 2) % 8 == 0):
        tm //= 2

    w_tiled, b_tiled = pack_maxout_params(
        w_torch_like, b_torch_like, out_features=out_features, out_pad=out_pad,
        pieces=pieces, tn=tn, dtype=compute_dtype)

    out = maxout(x2.astype(compute_dtype), w_tiled, b_tiled,
                 out_pad=out_pad, pieces=pieces, tm=tm, tn=tn, tk=tk)
    return out[:, :out_features] if out_pad != out_features else out


# ----------------------------------------------------------------------------- demo / check
if __name__ == "__main__":
    # Module hyperparameters (small, consistent with the nn.Module __init__).
    in_features, out_features, pieces = 32, 32, 4
    batch = 8

    key = jax.random.PRNGKey(0)
    kx, kw, kb = jax.random.split(key, 3)

    # torch nn.Linear weight is (out_features*pieces, in_features).
    w_torch_like = jax.random.normal(
        kw, (out_features * pieces, in_features), jnp.float32) * 0.1
    b_torch_like = jax.random.normal(
        kb, (out_features * pieces,), jnp.float32) * 0.1
    x = jax.random.normal(kx, (batch, in_features), jnp.float32)

    # Pure-JAX reference reproducing the PyTorch forward exactly.
    y_ref = x @ w_torch_like.T + b_torch_like
    y_ref = y_ref.reshape(-1, pieces, out_features).max(axis=1)

    # f32 parity mode (bit-for-bit semantics of the PyTorch module).
    out_f32 = maxout_forward(x, w_torch_like, b_torch_like,
                             out_features=out_features, pieces=pieces,
                             compute_dtype=jnp.float32)
    out_f32 = jax.block_until_ready(out_f32)
    assert out_f32.shape == (batch, out_features)
    assert jnp.allclose(out_f32, y_ref, atol=1e-5, rtol=1e-5), "f32 mismatch"

    # bf16 MXU mode (default fast path); looser tolerance for the bf16 cast.
    out_bf16 = maxout_forward(x, w_torch_like, b_torch_like,
                              out_features=out_features, pieces=pieces,
                              compute_dtype=jnp.bfloat16)
    out_bf16 = jax.block_until_ready(out_bf16)
    assert out_bf16.shape == (batch, out_features)
    assert jnp.allclose(out_bf16, y_ref, atol=2e-2, rtol=2e-2), "bf16 mismatch"

    print("KERNEL_OK")
</pallas_src>

<mosaic_0001>
module attributes {stable_mosaic.version = 11 : i64} {
  func.func @_maxout_kernel(%arg0: i32, %arg1: i32, %arg2: i32, %arg3: memref<8x32xf32, #tpu.memory_space<vmem>>, %arg4: memref<1x32x512xf32, #tpu.memory_space<vmem>>, %arg5: memref<1x1x512xf32, #tpu.memory_space<vmem>>, %arg6: memref<8x128xf32, #tpu.memory_space<vmem>>, %arg7: memref<8x512xf32, #tpu.memory_space<vmem>>) attributes {dimension_semantics = [#tpu.dimension_semantics<parallel>, #tpu.dimension_semantics<parallel>, #tpu.dimension_semantics<arbitrary>], iteration_bounds = array<i64: 1, 1, 1>, scalar_prefetch = 0 : i64, scratch_operands = 1 : i64, tpu.core_type = #tpu.core_type<tc>, window_params = [{transform_indices = @transform_0, window_bounds = array<i64: 8, 32>}, {transform_indices = @transform_1, window_bounds = array<i64: 1, 32, 512>}, {transform_indices = @transform_2, window_bounds = array<i64: 1, 1, 512>}, {transform_indices = @transform_3, window_bounds = array<i64: 8, 128>}]} {
    %c0_i32 = arith.constant 0 : i32
    %0 = arith.cmpi eq, %arg2, %c0_i32 : i32
    %1 = arith.extui %0 : i1 to i32
    %c0_i32_0 = arith.constant 0 : i32
    %2 = arith.cmpi ne, %1, %c0_i32_0 : i32
    scf.if %2 {
      %c0_11 = arith.constant 0 : index
      %c0_12 = arith.constant 0 : index
      %c0_13 = arith.constant 0 : index
      %13 = vector.load %arg5[%c0_11, %c0_12, %c0_13] : memref<1x1x512xf32, #tpu.memory_space<vmem>>, vector<1x1x512xf32>
      %14 = vector.shape_cast %13 : vector<1x1x512xf32> to vector<1x512xf32>
      %15 = vector.shape_cast %14 : vector<1x512xf32> to vector<1x512xf32>
      %16 = vector.broadcast %15 : vector<1x512xf32> to vector<8x512xf32>
      %c0_14 = arith.constant 0 : index
      %c0_15 = arith.constant 0 : index
      %17 = vector.load %arg7[%c0_14, %c0_15] : memref<8x512xf32, #tpu.memory_space<vmem>>, vector<8x512xf32>
      tpu.vector_store %arg7[%c0_14, %c0_15], %16 {strides = array<i32>} : memref<8x512xf32, #tpu.memory_space<vmem>>, vector<8x512xf32>,
    } else {
    }
    %c0 = arith.constant 0 : index
    %c0_1 = arith.constant 0 : index
    %3 = vector.load %arg7[%c0, %c0_1] : memref<8x512xf32, #tpu.memory_space<vmem>>, vector<8x512xf32>
    %c0_2 = arith.constant 0 : index
    %c0_3 = arith.constant 0 : index
    %4 = vector.load %arg3[%c0_2, %c0_3] : memref<8x32xf32, #tpu.memory_space<vmem>>, vector<8x32xf32>
    %c0_4 = arith.constant 0 : index
    %c0_5 = arith.constant 0 : index
    %c0_6 = arith.constant 0 : index
    %5 = vector.load %arg4[%c0_4, %c0_5, %c0_6] : memref<1x32x512xf32, #tpu.memory_space<vmem>>, vector<1x32x512xf32>
    %6 = vector.shape_cast %5 : vector<1x32x512xf32> to vector<32x512xf32>
    %cst = arith.constant dense<0.000000e+00> : vector<8x512xf32>
    %7 = tpu.matmul %4, %6, %cst {dimension_numbers = #tpu.dot_dimension_numbers<[1], [0], [0], [1], [0, 0, 1, 1], [], []>} : vector<8x32xf32>, vector<32x512xf32>, vector<8x512xf32> -> vector<8x512xf32>
    %8 = arith.addf %3, %7 : vector<8x512xf32>
    %c0_7 = arith.constant 0 : index
    %c0_8 = arith.constant 0 : index
    %9 = vector.load %arg7[%c0_7, %c0_8] : memref<8x512xf32, #tpu.memory_space<vmem>>, vector<8x512xf32>
    tpu.vector_store %arg7[%c0_7, %c0_8], %8 {strides = array<i32>} : memref<8x512xf32, #tpu.memory_space<vmem>>, vector<8x512xf32>,
    %c0_i32_9 = arith.constant 0 : i32
    %10 = arith.cmpi eq, %arg2, %c0_i32_9 : i32
    %11 = arith.extui %10 : i1 to i32
    %c0_i32_10 = arith.constant 0 : i32
    %12 = arith.cmpi ne, %11, %c0_i32_10 : i32
    scf.if %12 {
      %c0_11 = arith.constant 0 : index
      %c0_12 = arith.constant 0 : index
      %13 = vector.load %arg7[%c0_11, %c0_12] : memref<8x512xf32, #tpu.memory_space<vmem>>, vector<8x512xf32>
      %14 = vector.extract_strided_slice %13 {offsets = [0, 0], sizes = [8, 128], strides = [1, 1]} : vector<8x512xf32> to vector<8x128xf32>
      %15 = vector.extract_strided_slice %13 {offsets = [0, 128], sizes = [8, 128], strides = [1, 1]} : vector<8x512xf32> to vector<8x128xf32>
      %16 = arith.maximumf %14, %15 : vector<8x128xf32>
      %17 = vector.extract_strided_slice %13 {offsets = [0, 256], sizes = [8, 128], strides = [1, 1]} : vector<8x512xf32> to vector<8x128xf32>
      %18 = arith.maximumf %16, %17 : vector<8x128xf32>
      %19 = vector.extract_strided_slice %13 {offsets = [0, 384], sizes = [8, 128], strides = [1, 1]} : vector<8x512xf32> to vector<8x128xf32>
      %20 = arith.maximumf %18, %19 : vector<8x128xf32>
      %c0_13 = arith.constant 0 : index
      %c0_14 = arith.constant 0 : index
      %21 = vector.load %arg6[%c0_13, %c0_14] : memref<8x128xf32, #tpu.memory_space<vmem>>, vector<8x128xf32>
      tpu.vector_store %arg6[%c0_13, %c0_14], %20 {strides = array<i32>} : memref<8x128xf32, #tpu.memory_space<vmem>>, vector<8x128xf32>,
    } else {
    }
    return
  }
  func.func @transform_0(%arg0: i32, %arg1: i32, %arg2: i32) -> (i32, i32) {
    %c0_i32 = arith.constant 0 : i32
    return %arg0, %arg2 : i32, i32
  }
  func.func @transform_1(%arg0: i32, %arg1: i32, %arg2: i32) -> (i32, i32, i32) {
    %c0_i32 = arith.constant 0 : i32
    %c0_i32_0 = arith.constant 0 : i32
    return %arg1, %arg2, %c0_i32 : i32, i32, i32
  }
  func.func @transform_2(%arg0: i32, %arg1: i32, %arg2: i32) -> (i32, i32, i32) {
    %c0_i32 = arith.constant 0 : i32
    %c0_i32_0 = arith.constant 0 : i32
    %c0_i32_1 = arith.constant 0 : i32
    return %arg1, %c0_i32, %c0_i32_0 : i32, i32, i32
  }
  func.func @transform_3(%arg0: i32, %arg1: i32, %arg2: i32) -> (i32, i32) {
    %c0_i32 = arith.constant 0 : i32
    return %arg0, %arg1 : i32, i32
  }
}

</mosaic_0001>

<bundles_post_ra>
// kernel: tpu_custom_call.1
= control target key start
LH: loop header
LB: loop body
LE: loop exit
PB: predicated region body
PF: predicated region fallthrough
CT: control target
= control target key end

     0   :  { %8 = vsyncpa [#allocation4], 0  ;;  %s441_s0 = inlined_call_operand.hbm [shape: f32[8,32], index: 0, kind: input, shape index: {}]   ;;  %s442_s1 = inlined_call_operand.hbm [shape: f32[1,32,512], index: 1, kind: input, shape index: {}]   ;;  %s443_s2 = inlined_call_operand.vmem [shape: f32[1,1,512], index: 2, kind: input, shape index: {}]   ;;  %s444_s3 = inlined_call_operand.hbm [shape: f32[8,128], index: 3, kind: output, shape index: {}]  }
   0x1   :  { %9 = vsyncpa [#allocation7], 0 }
   0x2   :  { %10 = vsyncpa [#allocation5], 0  ;;  %s369_s12 = smov [#allocation3]   ;;  %s370_s14 = smov [#allocation6]  }
   0x3   :  { %s17_s13 = sshll.u32 %s369_s12, 4  ;;  %s26_s15 = sshll.u32 %s370_s14, 4  ;;  %s18_s13 = int_to_ptr.vmem [resolvable:$true] %s17_s13  ;;  %s395_s15 = int_to_ptr.vmem [resolvable:$true] %s26_s15 }
   0x4   :  { %s297_s18 = scalar_lea.hbm %s441_s0, 128 }
   0x5   :  { %p298_p0 = scmp.ne.s32.totalorder %s441_s0, %s297_s18  ;;  %p301_p1 = scmp.lt.u32.totalorder %s297_s18, %s441_s0 }
   0x7   :  { %p303_p2 = pnand %p301_p1, %p298_p0 }
   0x9   :  { %306 = shalt.err (!%p303_p2)
}
   0xa   :  { %s307_s23 = scalar_lea.vmem %s18_s13, 128  ;;  %p312_p4 = scmp.lt.s32.totalorder %s18_s13, %s18_s13 }
   0xb   :  { %p308_p3 = scmp.ne.s32.totalorder %s18_s13, %s307_s23  ;;  %p313_p5 = scmp.lt.s32.totalorder %s307_s23, %s307_s23 }
   0xd   :  { %p314_p6 = por %p313_p5, %p312_p4 }
   0xf   :  { %p315_p7 = pnand %p314_p6, %p308_p3 }
  0x11   :  { %318 = shalt.err (!%p315_p7)
}
  0x12   :  { %20 = dma.hbm_to_vmem [thread:$0]  %s441_s0, 128, %s18_s13, [#allocation4]  }
  0x13   :  { %s319_s28 = scalar_lea.hbm %s442_s1, 2048 }
  0x14   :  { %p320_p8 = scmp.ne.s32.totalorder %s442_s1, %s319_s28  ;;  %p323_p9 = scmp.lt.u32.totalorder %s319_s28, %s442_s1 }
  0x16   :  { %p325_p10 = pnand %p323_p9, %p320_p8 }
  0x18   :  { %328 = shalt.err (!%p325_p10)
}
  0x19   :  { %s329_s6 = scalar_lea.vmem %s395_s15, 2048  ;;  %p334_p12 = scmp.lt.s32.totalorder %s395_s15, %s395_s15 }
  0x1a   :  { %p330_p11 = scmp.ne.s32.totalorder %s395_s15, %s329_s6  ;;  %p335_p13 = scmp.lt.s32.totalorder %s329_s6, %s329_s6 }
  0x1c   :  { %p336_p0 = por %p335_p13, %p334_p12 }
  0x1e   :  { %p337_p1 = pnand %p336_p0, %p330_p11 }
  0x20   :  { %340 = shalt.err (!%p337_p1)
}
  0x21   :  { %s371_s0 = smov 512   ;;  %s372_s7 = smov 32  }
  0x22   :  { %32 = dma.hbm_to_vmem [thread:$0]  %s442_s1, 2048, %s395_s15, [#allocation7], %s371_s0, %s371_s0, %s372_s7  }
  0x23   :  { %363 = dma.done.wait [#allocation4], 128  }
  0x24   :  { %364 = vsyncadd [#allocation4], 4294967168 }
  0x25   :  { %365 = dma.done.wait [#allocation7], 2048  }
  0x26   :  { %366 = vsyncadd [#allocation7], 4294965248  ;;  %v373_v0 = vmov 0.0   ;;  %v77_v1 = vld [vmem:[#allocation6 + $0x8] sm:$0xff]  ;;  %v76_v3 = vld [vmem:[#allocation6] sm:$0xff]  ;;  %vm92_vm0 = vcmask 261120   ;;  %v47_v26 = vlaneseq }
  0x27   :  { %160 = vmatprep.mubr.f32.mxu0 %v373_v0  ;;  %231 = vmatprep.mubr.f32.mxu1 %v373_v0  ;;  %v81_v2 = vld [vmem:[#allocation6 + $0x28] sm:$0xff]  ;;  %v80_v5 = vld [vmem:[#allocation6 + $0x20] sm:$0xff]  ;;  %v79_v6 = vld [vmem:[#allocation6 + $0x18] sm:$0xff]  ;;  %s374_s11 = smov [#allocation8]  }
  0x28   :  { %v275_v4 = vpack.c.bf16 %v81_v2, %v77_v1  ;;  %v83_v7 = vld [vmem:[#allocation6 + $0x38] sm:$0xff]  ;;  %v277_v8 = vpack.c.bf16 %v80_v5, %v76_v3  ;;  %v78_v10 = vld [vmem:[#allocation6 + $0x10] sm:$0xff]  ;;  %v85_v12 = vld [vmem:[#allocation6 + $0x48] sm:$0xff]  ;;  %v48_v27 = vshrl.u32 %v47_v26, 7  ;;  %s263_s12 = sshll.u32 %s374_s11, 4  ;;  %s264_s12 = int_to_ptr.vmem [resolvable:$true] %s263_s12 }
  0x29   :  { %v283_v9 = vpack.c.bf16 %v83_v7, %v79_v6  ;;  %v82_v11 = vld [vmem:[#allocation6 + $0x30] sm:$0xff]  ;;  %v89_v14 = vld [vmem:[#allocation6 + $0x68] sm:$0xff]  ;;  %v84_v15 = vld [vmem:[#allocation6 + $0x40] sm:$0xff]  ;;  %p346_p3 = scmp.lt.s32.totalorder %s264_s12, %s264_s12 }
  0x2a   :  { %276 = vmatprep.subr.bf16.mxu0 %v275_v4  ;;  %v285_v13 = vpack.c.bf16 %v82_v11, %v78_v10  ;;  %v88_v16 = vld [vmem:[#allocation6 + $0x60] sm:$0xff]  ;;  %v279_v17 = vpack.c.bf16 %v89_v14, %v85_v12  ;;  %v87_v19 = vld [vmem:[#allocation6 + $0x58] sm:$0xff]  ;;  %v86_v21 = vld [vmem:[#allocation6 + $0x50] sm:$0xff]  ;;  %v49_v28 = vsub.s32 0, %v48_v27  ;;  %v53_v30 = vsub.s32 1, %v48_v27 }
  0x2b   :  { %278 = vmatpush1.bf16.msra.mxu0 %v277_v8  ;;  %284 = vmatprep.subr.bf16.mxu1 %v283_v9  ;;  %v281_v18 = vpack.c.bf16 %v88_v16, %v84_v15  ;;  %v91_v20 = vld [vmem:[#allocation6 + $0x78] sm:$0xff]  ;;  %v90_v23 = vld [vmem:[#allocation6 + $0x70] sm:$0xff]  ;;  %v57_v31 = vsub.s32 2, %v48_v27  ;;  %v61_v35 = vsub.s32 3, %v48_v27 }
  0x2c   :  { %286 = vmatpush1.bf16.msra.mxu1 %v285_v13  ;;  %v287_v22 = vpack.c.bf16 %v91_v20, %v87_v19  ;;  %280 = vmatprep.subr.bf16.mxu0 %v279_v17  ;;  %v289_v24 = vpack.c.bf16 %v90_v23, %v86_v21  ;;  %v75_v25 = vld [vmem:[#allocation3] sm:$0xff] }
  0x2d   :  { %v45_v29 = vld [vmem:[%s443_s2] sm:$0xf]  ;;  %s341_s2 = scalar_lea.vmem %s264_s12, 128 }
  0x2e   :  { %288 = vmatprep.subr.bf16.mxu1 %v287_v22  ;;  %v50_v32 = vrot.slane %v45_v29, %v49_v28  ;;  %v54_v33 = vrot.slane %v45_v29, %v53_v30  ;;  %v58_v34 = vrot.slane %v45_v29, %v57_v31  ;;  %v62_v42 = vrot.slane %v45_v29, %v61_v35  ;;  %p342_p2 = scmp.ne.s32.totalorder %s264_s12, %s341_s2  ;;  %p347_p4 = scmp.lt.s32.totalorder %s341_s2, %s341_s2 }
  0x2f   :  { %282 = vmatpush1.bf16.msra.mxu0 %v281_v18 }
  0x30   :  { %290 = vmatpush1.bf16.msra.mxu1 %v289_v24  ;;  %p348_p5 = por %p347_p4, %p346_p3 }
  0x32   :  { %273 = vmatmul.mubr.msk.f32.vlgmr.msra.gmra.mrb[0].mxu0 %vm92_vm0, %v75_v25  ;;  %p349_p6 = pnand %p348_p5, %p342_p2 }
  0x33   :  { %274 = vmatmul.mubr.msk.f32.vlgmr.msra.gmra.mrb[0].mxu1 %vm92_vm0, %v75_v25 }
 0x105   :  { %v162_v36 = vpop.f32.mrb[0].mxu0 }
 0x106   :  { %v238_v37 = vadd.f32 %v162_v36, %v50_v32  ;;  %v164_v38 = vpop.f32.mrb[1].mxu0  ;;  %v233_v39 = vpop.f32.mrb[0].mxu1 }
 0x107   :  { %v239_v40 = vadd.f32 %v164_v38, %v54_v33  ;;  %v240_v41 = vadd.f32 %v233_v39, %v58_v34  ;;  %v235_v43 = vpop.f32.mrb[1].mxu1 }
 0x108   :  { %v241_v46 = vadd.f32 %v235_v43, %v62_v42 }
 0x109   :  { %v253_v44 = vmax.f32 %v238_v37, %v239_v40 }
 0x10b   :  { %v254_v45 = vmax.f32 %v253_v44, %v240_v41 }
 0x10d   :  { %v255_v47 = vmax.f32 %v254_v45, %v241_v46 }
 0x10f   :  { %256 = vst [vmem:[#allocation8] sm:$0xff] %v255_v47 }
 0x110   :  { %352 = shalt.err (!%p349_p6)
}
 0x111   :  { %s353_s15 = scalar_lea.hbm %s444_s3, 128 }
 0x112   :  { %p354_p7 = scmp.ne.s32.totalorder %s444_s3, %s353_s15  ;;  %p357_p8 = scmp.lt.u32.totalorder %s353_s15, %s444_s3 }
 0x114   :  { %p359_p9 = pnand %p357_p8, %p354_p7 }
 0x116   :  { %362 = shalt.err (!%p359_p9)
}
 0x117   :  { %266 = dma.vmem_to_hbm [thread:$0]  %s264_s12, 128, %s444_s3, [#allocation5]  }
 0x118   :  { %367 = dma.done.wait [#allocation5], 128  }
 0x119   :  { %368 = vsyncadd [#allocation5], 4294967168 }
 0x11a   :  { %270 = vsyncpa [#allocation4], 1 }
 0x11b   :  { %271 = vsyncpa [#allocation7], 1 }
 0x11c   :  { %272 = vsyncpa [#allocation5], 1 }

</bundles_post_ra>
